<compile_context>
chip_gen: v5e
topology: v5e:2x2
jax: 0.10.0
libtpu: 0.0.40
codegen_flags: <defaults>
</compile_context>

<pallas_src>
import functools

import jax
import jax.numpy as jnp
from jax.experimental import pallas as pl
from jax.experimental.pallas import tpu as pltpu


def _round_up(x, m):
    return ((x + m - 1) // m) * m


def servernet_kernel(x_ref, w1_ref, b1_ref, w2_ref, b2_ref, o_ref):
    # fc1 (bf16 inputs, f32 accumulate) + bias + ReLU in f32.
    h = jnp.dot(x_ref[...], w1_ref[...], preferred_element_type=jnp.float32)
    h = jnp.maximum(h + b1_ref[...], 0.0)                    # (TM, 10)
    # fc2 + bias + sigmoid.  K=10, N=2: essentially free; kept in f32.
    z = jnp.dot(h, w2_ref[...], preferred_element_type=jnp.float32)
    z = z + b2_ref[...]                                      # (TM, 2)
    o_ref[...] = jax.nn.sigmoid(z).astype(o_ref.dtype)


@functools.partial(jax.jit, static_argnames=("block_rows",))
def servernet_forward(x, w1, b1, w2, b2, *, block_rows=1024):
    """x: (B, 123) f32; w1: (123, 10); b1: (10,)|(1,10); w2: (10, 2); b2: (2,)|(1,2).

    Weights are stored (in_features, out_features), i.e. x @ W + b, equivalent
    to PyTorch's x @ W.T with W of shape (out, in).
    """
    B, K = x.shape
    H = w1.shape[1]            # 10
    O = w2.shape[1]            # 2
    K_PAD = 128                # lane-align the fc1 contraction (123 -> 128)

    # --- wrapper-side layout / dtype prep (one-time, tiny) -------------------
    # Zero-pad the contraction dim of both x and w1 (exact: extra K entries
    # contribute 0 to the dot product).
    x_p = jnp.zeros((B, K_PAD), x.dtype).at[:, :K].set(x)
    w1_p = jnp.zeros((K_PAD, H), w1.dtype).at[:K, :].set(w1)

    # bf16 stream for the dominant HBM traffic (x) and its weight; f32 acc in
    # the kernel via preferred_element_type.
    x_p = x_p.astype(jnp.bfloat16)
    w1_p = w1_p.astype(jnp.bfloat16)
    w2_f = w2.astype(jnp.float32)
    b1_f = b1.astype(jnp.float32).reshape(1, H)
    b2_f = b2.astype(jnp.float32).reshape(1, O)

    # --- batch tiling ---------------------------------------------------------
    # Tile rows: multiple of 8 (sublane), clamped to the (padded) batch.
    tm = min(_round_up(block_rows, 8), _round_up(B, 8))
    b_pad = _round_up(B, tm)
    if b_pad != B:
        x_p = jnp.zeros((b_pad, K_PAD), x_p.dtype).at[:B, :].set(x_p)
    n_tiles = b_pad // tm

    out_padded = pl.pallas_call(
        servernet_kernel,
        out_shape=jax.ShapeDtypeStruct((b_pad, O), jnp.float32),
        grid_spec=pltpu.PrefetchScalarGridSpec(
            num_scalar_prefetch=0,
            grid=(n_tiles,),
            in_specs=[
                # x: one batch tile per grid step (double-buffered by Pallas).
                pl.BlockSpec((tm, K_PAD), lambda i: (i, 0)),
                # Weights / biases: constant index -> stay VMEM-resident.
                pl.BlockSpec((K_PAD, H), lambda i: (0, 0)),
                pl.BlockSpec((1, H), lambda i: (0, 0)),
                pl.BlockSpec((H, O), lambda i: (0, 0)),
                pl.BlockSpec((1, O), lambda i: (0, 0)),
            ],
            out_specs=pl.BlockSpec((tm, O), lambda i: (i, 0)),
        ),
        compiler_params=pltpu.CompilerParams(
            # Batch tiles are independent -> shard across TensorCores (v7x).
            dimension_semantics=("parallel",)),
    )(x_p, w1_p, b1_f, w2_f, b2_f)

    return out_padded[:B]


def init_params(key):
    # Deterministic init mimicking nn.Linear's U(-1/sqrt(fan_in), 1/sqrt(fan_in)).
    k1, k2, k3, k4 = jax.random.split(key, 4)
    lim1 = 1.0 / jnp.sqrt(123.0)
    lim2 = 1.0 / jnp.sqrt(10.0)
    w1 = jax.random.uniform(k1, (123, 10), jnp.float32, -lim1, lim1)
    b1 = jax.random.uniform(k2, (10,), jnp.float32, -lim1, lim1)
    w2 = jax.random.uniform(k3, (10, 2), jnp.float32, -lim2, lim2)
    b2 = jax.random.uniform(k4, (2,), jnp.float32, -lim2, lim2)
    return w1, b1, w2, b2


def _ref(x, w1, b1, w2, b2):
    return jax.nn.sigmoid(jnp.maximum(x @ w1 + b1, 0.0) @ w2 + b2)


if __name__ == "__main__":
    key = jax.random.PRNGKey(0)
    k_x, k_x2, k_p = jax.random.split(key, 3)
    w1, b1, w2, b2 = init_params(k_p)

    # Small sanity case (single tile).
    B = 8
    x = jax.random.normal(k_x, (B, 123), jnp.float32)
    out = jax.block_until_ready(servernet_forward(x, w1, b1, w2, b2))
    ref = _ref(x, w1, b1, w2, b2)
    assert out.shape == (B, 2)
    # bf16 input stream -> relax tolerance accordingly.
    assert jnp.allclose(out, ref, atol=2e-2, rtol=2e-2)

    # Multi-tile case (exercises grid > 1 and ragged batch padding).
    B2 = 260
    x2 = jax.random.normal(k_x2, (B2, 123), jnp.float32)
    out2 = jax.block_until_ready(
        servernet_forward(x2, w1, b1, w2, b2, block_rows=128))
    ref2 = _ref(x2, w1, b1, w2, b2)
    assert out2.shape == (B2, 2)
    assert jnp.allclose(out2, ref2, atol=2e-2, rtol=2e-2)

    print("KERNEL_OK")
</pallas_src>

<mosaic_0001>
module attributes {stable_mosaic.version = 11 : i64} {
  func.func @servernet_kernel(%arg0: i32, %arg1: memref<8x128xbf16, #tpu.memory_space<vmem>>, %arg2: memref<128x10xbf16, #tpu.memory_space<vmem>>, %arg3: memref<1x10xf32, #tpu.memory_space<vmem>>, %arg4: memref<10x2xf32, #tpu.memory_space<vmem>>, %arg5: memref<1x2xf32, #tpu.memory_space<vmem>>, %arg6: memref<8x2xf32, #tpu.memory_space<vmem>>) attributes {dimension_semantics = [#tpu.dimension_semantics<parallel>], iteration_bounds = array<i64: 1>, scalar_prefetch = 0 : i64, scratch_operands = 0 : i64, tpu.core_type = #tpu.core_type<tc>, window_params = [{transform_indices = @transform_0, window_bounds = array<i64: 8, 128>}, {pipeline_mode = #tpu.pipeline_mode<synchronous>, transform_indices = @transform_1, window_bounds = array<i64: 128, 10>}, {pipeline_mode = #tpu.pipeline_mode<synchronous>, transform_indices = @transform_2, window_bounds = array<i64: 1, 10>}, {pipeline_mode = #tpu.pipeline_mode<synchronous>, transform_indices = @transform_3, window_bounds = array<i64: 10, 2>}, {pipeline_mode = #tpu.pipeline_mode<synchronous>, transform_indices = @transform_4, window_bounds = array<i64: 1, 2>}, {transform_indices = @transform_5, window_bounds = array<i64: 8, 2>}]} {
    %c0 = arith.constant 0 : index
    %c0_0 = arith.constant 0 : index
    %0 = vector.load %arg1[%c0, %c0_0] : memref<8x128xbf16, #tpu.memory_space<vmem>>, vector<8x128xbf16>
    %c0_1 = arith.constant 0 : index
    %c0_2 = arith.constant 0 : index
    %1 = vector.load %arg2[%c0_1, %c0_2] : memref<128x10xbf16, #tpu.memory_space<vmem>>, vector<128x10xbf16>
    %cst = arith.constant dense<0.000000e+00> : vector<8x10xf32>
    %2 = tpu.matmul %0, %1, %cst {dimension_numbers = #tpu.dot_dimension_numbers<[1], [0], [0], [1], [0, 0, 1, 1], [], []>} : vector<8x128xbf16>, vector<128x10xbf16>, vector<8x10xf32> -> vector<8x10xf32>
    %c0_3 = arith.constant 0 : index
    %c0_4 = arith.constant 0 : index
    %3 = vector.load %arg3[%c0_3, %c0_4] : memref<1x10xf32, #tpu.memory_space<vmem>>, vector<1x10xf32>
    %4 = vector.broadcast %3 : vector<1x10xf32> to vector<8x10xf32>
    %5 = arith.addf %2, %4 : vector<8x10xf32>
    %cst_5 = arith.constant 0.000000e+00 : f32
    %6 = vector.broadcast %cst_5 : f32 to vector<8x10xf32>
    %7 = arith.maximumf %5, %6 : vector<8x10xf32>
    %c0_6 = arith.constant 0 : index
    %c0_7 = arith.constant 0 : index
    %8 = vector.load %arg4[%c0_6, %c0_7] : memref<10x2xf32, #tpu.memory_space<vmem>>, vector<10x2xf32>
    %cst_8 = arith.constant dense<0.000000e+00> : vector<8x2xf32>
    %9 = tpu.matmul %7, %8, %cst_8 {dimension_numbers = #tpu.dot_dimension_numbers<[1], [0], [0], [1], [0, 0, 1, 1], [], []>} : vector<8x10xf32>, vector<10x2xf32>, vector<8x2xf32> -> vector<8x2xf32>
    %c0_9 = arith.constant 0 : index
    %c0_10 = arith.constant 0 : index
    %10 = vector.load %arg5[%c0_9, %c0_10] : memref<1x2xf32, #tpu.memory_space<vmem>>, vector<1x2xf32>
    %11 = vector.broadcast %10 : vector<1x2xf32> to vector<8x2xf32>
    %12 = arith.addf %9, %11 : vector<8x2xf32>
    %13 = arith.negf %12 : vector<8x2xf32>
    %14 = math.exp %13 : vector<8x2xf32>
    %cst_11 = arith.constant 1.000000e+00 : f32
    %15 = vector.broadcast %cst_11 : f32 to vector<8x2xf32>
    %16 = arith.addf %15, %14 : vector<8x2xf32>
    %17 = arith.divf %15, %16 : vector<8x2xf32>
    %c0_12 = arith.constant 0 : index
    %c0_13 = arith.constant 0 : index
    %18 = vector.load %arg6[%c0_12, %c0_13] : memref<8x2xf32, #tpu.memory_space<vmem>>, vector<8x2xf32>
    tpu.vector_store %arg6[%c0_12, %c0_13], %17 {strides = array<i32>} : memref<8x2xf32, #tpu.memory_space<vmem>>, vector<8x2xf32>,
    return
  }
  func.func @transform_0(%arg0: i32) -> (i32, i32) {
    %c0_i32 = arith.constant 0 : i32
    %c0_i32_0 = arith.constant 0 : i32
    return %arg0, %c0_i32 : i32, i32
  }
  func.func @transform_1(%arg0: i32) -> (i32, i32) {
    %c0_i32 = arith.constant 0 : i32
    %c0_i32_0 = arith.constant 0 : i32
    %c0_i32_1 = arith.constant 0 : i32
    return %c0_i32, %c0_i32_0 : i32, i32
  }
  func.func @transform_2(%arg0: i32) -> (i32, i32) {
    %c0_i32 = arith.constant 0 : i32
    %c0_i32_0 = arith.constant 0 : i32
    %c0_i32_1 = arith.constant 0 : i32
    return %c0_i32, %c0_i32_0 : i32, i32
  }
  func.func @transform_3(%arg0: i32) -> (i32, i32) {
    %c0_i32 = arith.constant 0 : i32
    %c0_i32_0 = arith.constant 0 : i32
    %c0_i32_1 = arith.constant 0 : i32
    return %c0_i32, %c0_i32_0 : i32, i32
  }
  func.func @transform_4(%arg0: i32) -> (i32, i32) {
    %c0_i32 = arith.constant 0 : i32
    %c0_i32_0 = arith.constant 0 : i32
    %c0_i32_1 = arith.constant 0 : i32
    return %c0_i32, %c0_i32_0 : i32, i32
  }
  func.func @transform_5(%arg0: i32) -> (i32, i32) {
    %c0_i32 = arith.constant 0 : i32
    %c0_i32_0 = arith.constant 0 : i32
    return %arg0, %c0_i32 : i32, i32
  }
}

</mosaic_0001>

<bundles_post_ra>
// kernel: servernet_forward.1
= control target key start
LH: loop header
LB: loop body
LE: loop exit
PB: predicated region body
PF: predicated region fallthrough
CT: control target
= control target key end

     0   :  { %vm113_vm0 = vcmask 1041408   ;;  %vm109_vm1 = vcmask 80896   ;;  %vm156_vm5 = vcmask 15360   ;;  %s283_s1 = inlined_call_operand.vmem [shape: bf16[128,10], index: 1, kind: input, shape index: {}]   ;;  %s284_s2 = inlined_call_operand.vmem [shape: f32[1,10], index: 2, kind: input, shape index: {}]   ;;  %s285_s0 = inlined_call_operand.vmem [shape: bf16[8,128], index: 0, kind: input, shape index: {}]   ;;  %s286_s4 = inlined_call_operand.vmem [shape: f32[1,2], index: 4, kind: input, shape index: {}]   ;;  %s287_s3 = inlined_call_operand.vmem [shape: f32[10,2], index: 3, kind: input, shape index: {}]   ;;  %s288_s5 = inlined_call_operand.vmem [shape: f32[8,2], index: 5, kind: output, shape index: {}]  }
   0x1   :  { %v204_v0 = vld [vmem:[%s283_s1 + $0x38] sm:$0xff]  ;;  %v203_v1 = vld [vmem:[%s283_s1 + $0x30] sm:$0xff]  ;;  %v202_v2 = vld [vmem:[%s283_s1 + $0x28] sm:$0xff] }
   0x2   :  { %89 = vmatpush.bf16.msra.mxu0 %v204_v0  ;;  %v201_v3 = vld [vmem:[%s283_s1 + $0x20] sm:$0xff]  ;;  %v200_v4 = vld [vmem:[%s283_s1 + $0x18] sm:$0xff]  ;;  %v199_v5 = vld [vmem:[%s283_s1 + $0x10] sm:$0xff] }
   0x3   :  { %v198_v6 = vld [vmem:[%s283_s1 + $0x8] sm:$0xff]  ;;  %v197_v7 = vld [vmem:[%s283_s1] sm:$0xff] }
   0x4   :  { %v20_v8 = vld [vmem:[%s285_s0] sm:$0xf]  ;;  %v104_v9 = vld [vmem:[%s287_s3 + $0x8] sm:$0x3] }
   0x5   :  { %194 = vmatpush.msk.msra.mxu1 %vm113_vm0, %v104_v9  ;;  %v103_v10 = vld [vmem:[%s287_s3] sm:$0xff] }
   0x6   :  { %90 = vmatpush.bf16.msra.mxu0 %v203_v1  ;;  %v205_v11 = vld [vmem:[%s284_s2] ss:$0 sm:$0xff] }
   0x7   :  { %132 = vmatpush.msra.mxu1 %v103_v10  ;;  %v206_v16 = vld [vmem:[%s286_s4] ss:$0 sm:$0xff] }
   0xa   :  { %91 = vmatpush.bf16.msra.mxu0 %v202_v2 }
   0xe   :  { %92 = vmatpush.bf16.msra.mxu0 %v201_v3 }
  0x12   :  { %93 = vmatpush.bf16.msra.mxu0 %v200_v4 }
  0x16   :  { %94 = vmatpush.bf16.msra.mxu0 %v199_v5 }
  0x1a   :  { %95 = vmatpush.bf16.msra.mxu0 %v198_v6 }
  0x1e   :  { %96 = vmatpush.bf16.msra.mxu0 %v197_v7 }
  0x21   :  { %97 = vmatmul.bf16.vlgmr.msra.gmra.mxu0 %v20_v8 }
  0x9e   :  { %v98_v12 = vpop.f32.mrf.mxu0 }
  0x9f   :  { %v99_v13 = vadd.f32 %v205_v11, %v98_v12 }
  0xa1   :  { %v102_v14 = vmax.f32 %v99_v13, 0.0 }
  0xa3   :  { %195 = vmatmul.msk.f32.vlgmr.msra.gmra.mxu1 %vm109_vm1, %v102_v14 }
  0xa6   :  { %v100_v15 = vpop.f32.mrf.mxu0 }
 0x120   :  { %v134_v17 = vpop.f32.mrf.mxu1 }
 0x121   :  { %v135_v18 = vadd.f32 %v206_v16, %v134_v17 }
 0x123   :  { %v196_v19 = vmul.f32 -1.442695, %v135_v18 }
 0x125   :  { %207 = vpow2.f32 %v196_v19 }
 0x12b   :  { %v208_v20 = vpop.eup %207 }
 0x12c   :  { %v140_v21 = vadd.f32 1.0, %v208_v20 }
 0x12e   :  { %209 = vrcp.f32 %v140_v21  ;;  %v152_v25 = vand.u32 2147483648, %v140_v21  ;;  %v150_v27 = vand.u32 2147483647, %v140_v21  ;;  %vm146_vm3 = vweird.f32 %v140_v21 }
 0x130   :  { %v153_v29 = vor.u32 1.1754944e-38, %v152_v25  ;;  %vm151_vm6 = vcmp.eq.f32.partialorder %v150_v27, 8.507059e+37 }
 0x134   :  { %v210_v22 = vpop.eup %209 }
 0x135   :  { %v142_v23 = vmul.f32 %v210_v22, %v140_v21  ;;  %vm147_vm2 = vweird.f32 %v210_v22 }
 0x136   :  { %vm148_vm4 = vmor %vm146_vm3, %vm147_vm2 }
 0x137   :  { %v143_v24 = vsub.f32 1.0, %v142_v23 }
 0x139   :  { %v144_v26 = vmul.f32 %v210_v22, %v143_v24 }
 0x13b   :  { %v145_v28 = vadd.f32 %v210_v22, %v144_v26 }
 0x13d   :  { %v149_v30 = vsel %vm148_vm4, %v210_v22, %v145_v28 }
 0x13e   :  { %v154_v31 = vsel %vm151_vm6, %v153_v29, %v149_v30 }
 0x13f   :  { %157 = vst.msk [vmem:[%s288_s5] sm:$0xff] %vm156_vm5, %v154_v31 }

</bundles_post_ra>
